<compile_context>
chip_gen: v5e
topology: v5e:2x2
jax: 0.10.0
libtpu: 0.0.40
codegen_flags: <defaults>
</compile_context>

<pallas_src>
import jax
import jax.numpy as jnp
from jax.experimental import pallas as pl
from jax.experimental.pallas import tpu as pltpu


_LANE = 128
_TARGET_TILE_BYTES = 2 * 1024 * 1024       # ~1-2 MiB per streamed buffer
_MAX_PIPELINE_BYTES = 24 * 1024 * 1024     # 4 streams x 2 buffers; fits v7x's 64 MiB VMEM
_VMEM_LIMIT_BYTES = 48 * 1024 * 1024       # raise scoped VMEM (16/32 MiB defaults), < v7x physical


def _choose_block_rows(total_rows, row_bytes):
    """Row-tile size: ~1-2 MiB per buffer, double-buffered 4-stream working set under
    ~24 MiB, and >= 2 grid steps whenever possible (megacore sharding + DMA overlap)."""
    if total_rows <= 8:
        return total_rows                      # sub-8 blocks must be full-extent
    by_target = _TARGET_TILE_BYTES // row_bytes
    by_budget = _MAX_PIPELINE_BYTES // (8 * row_bytes)   # 4 arrays x 2 buffers
    rows = max(8, min(total_rows, by_target, by_budget))
    # Prefer >= 8 grid steps while tiles stay >= ~512 KiB.
    eighth = total_rows // 8
    if eighth >= 8 and eighth * row_bytes >= 512 * 1024:
        rows = min(rows, eighth)
    # Never let the grid collapse to a single step.
    rows = min(rows, max(8, total_rows // 2))
    rows = max(8, (rows // 8) * 8)             # block rows must be a multiple of 8
    return rows


# --------------------------------------------------------------------------------------
# Lane-packed kernel (D < 128): arrays are viewed as (B*D/L, L), L = 128.
# Each kernel row holds P = L/D consecutive batch rows, so every vreg / DMA / store is
# fully lane-dense.  The segmented per-row dot products (and their broadcast back over
# each D-lane segment) are a single matmul against a precomputed block-diagonal matrix.
# --------------------------------------------------------------------------------------
def _flat_kernel(v_ref, e_ref, mv_ref, me_ref, b_ref, vo_ref, eo_ref):
    v = v_ref[...]                               # (TB, L), input dtype
    e = e_ref[...]                               # (TB, L)
    L = v.shape[-1]
    # mv: [M_ev | M_ee], me: [M_vv | M_ve]; (x @ M)[r, l] = <x_row(l), w> broadcast per segment.
    sv = jnp.dot(v, mv_ref[...], preferred_element_type=jnp.float32)   # (TB, 2L)
    se = jnp.dot(e, me_ref[...], preferred_element_type=jnp.float32)   # (TB, 2L)
    cd = v.dtype
    sv = sv.astype(cd)
    se = se.astype(cd)
    b_v = b_ref[0].astype(cd)                    # b_vv + b_ev (pre-summed, SMEM scalar)
    b_e = b_ref[1].astype(cd)                    # b_ve + b_ee
    vo_ref[...] = (v * se[:, :L] + e * sv[:, :L] + b_v).astype(vo_ref.dtype)
    eo_ref[...] = (v * se[:, L:] + e * sv[:, L:] + b_e).astype(eo_ref.dtype)


# --------------------------------------------------------------------------------------
# Structured kernel (D >= 128 or un-packable shapes): per-row dots via VPU multiply +
# XLU lane reduction on (4, D) weight rows (no lane-padded (D, 4) operand, no MXU).
# --------------------------------------------------------------------------------------
def _rows_kernel(v_ref, e_ref, w_ref, b_ref, vo_ref, eo_ref):
    v = v_ref[...]                               # (TB, D)
    e = e_ref[...]                               # (TB, D)
    w = w_ref[...]                               # (4, D): [w_vv, w_ev, w_ve, w_ee]
    s_e_vv = jnp.sum(e * w[0:1, :], axis=-1, keepdims=True)   # (TB, 1)
    s_v_ev = jnp.sum(v * w[1:2, :], axis=-1, keepdims=True)
    s_e_ve = jnp.sum(e * w[2:3, :], axis=-1, keepdims=True)
    s_v_ee = jnp.sum(v * w[3:4, :], axis=-1, keepdims=True)
    vo_ref[...] = (v * s_e_vv + e * s_v_ev + b_ref[0]).astype(vo_ref.dtype)
    eo_ref[...] = (v * s_e_ve + e * s_v_ee + b_ref[1]).astype(eo_ref.dtype)


def _block_scale_matrix(w_row, reps):
    """(reps*D, reps*D) block-diagonal M with M[p*D+d1, p*D+d2] = w_row[d1]:
    x_flat @ M gives, at every lane, the dot <original row, w_row>, already broadcast
    across that row's D-lane segment (segmented dot + expansion in one MXU op)."""
    d = w_row.shape[0]
    blk = jnp.broadcast_to(w_row[:, None], (d, d))
    return jnp.kron(jnp.eye(reps, dtype=w_row.dtype), blk)


def cross_compress_unit(v, e, weights, biases):
    """Forward of MKR's CrossCompressUnit.
    v, e: (B, D).  weights: (4, D) rows [w_vv, w_ev, w_ve, w_ee].  biases: (4,)."""
    B, D = v.shape
    assert e.shape == (B, D)
    w = jnp.asarray(weights, jnp.float32)
    b = jnp.asarray(biases, jnp.float32)
    bias2 = jnp.stack([b[0] + b[1], b[2] + b[3]])            # (2,) pre-summed biases

    itemsize = jnp.dtype(v.dtype).itemsize
    compiler_params = pltpu.CompilerParams(
        dimension_semantics=("parallel",),
        vmem_limit_bytes=_VMEM_LIMIT_BYTES)

    packable = (D < _LANE) and (_LANE % D == 0) and (B % (_LANE // D) == 0)

    if packable:
        # ---- lane-dense path ----
        L = _LANE
        P = L // D
        rows = (B * D) // L
        tb = _choose_block_rows(rows, L * itemsize)
        m_dtype = v.dtype if v.dtype == jnp.bfloat16 else jnp.float32
        mv = jnp.concatenate([_block_scale_matrix(w[1], P),              # w_ev
                              _block_scale_matrix(w[3], P)], axis=1).astype(m_dtype)
        me = jnp.concatenate([_block_scale_matrix(w[0], P),              # w_vv
                              _block_scale_matrix(w[2], P)], axis=1).astype(m_dtype)
        v2 = v.reshape(rows, L)                   # free: row-major contiguous reshape
        e2 = e.reshape(rows, L)
        row_spec = pl.BlockSpec((tb, L), lambda i: (i, 0))
        vo, eo = pl.pallas_call(
            _flat_kernel,
            grid=(pl.cdiv(rows, tb),),
            in_specs=[
                row_spec,                                           # v (lane-packed)
                row_spec,                                           # e (lane-packed)
                pl.BlockSpec((L, 2 * L), lambda i: (0, 0)),         # [M_ev | M_ee]
                pl.BlockSpec((L, 2 * L), lambda i: (0, 0)),         # [M_vv | M_ve]
                pl.BlockSpec(memory_space=pltpu.MemorySpace.SMEM),  # summed biases
            ],
            out_specs=(row_spec, row_spec),
            out_shape=(jax.ShapeDtypeStruct((rows, L), v.dtype),
                       jax.ShapeDtypeStruct((rows, L), e.dtype)),
            compiler_params=compiler_params,
        )(v2, e2, mv, me, bias2)
        return vo.reshape(B, D), eo.reshape(B, D)

    # ---- structured path (D already lane-dense, or shapes that cannot be packed) ----
    tb = _choose_block_rows(B, D * itemsize)
    row_spec = pl.BlockSpec((tb, D), lambda i: (i, 0))
    vo, eo = pl.pallas_call(
        _rows_kernel,
        grid=(pl.cdiv(B, tb),),
        in_specs=[
            row_spec,                                           # v
            row_spec,                                           # e
            pl.BlockSpec((4, D), lambda i: (0, 0)),             # weight rows (resident)
            pl.BlockSpec(memory_space=pltpu.MemorySpace.SMEM),  # summed biases
        ],
        out_specs=(row_spec, row_spec),
        out_shape=(jax.ShapeDtypeStruct((B, D), v.dtype),
                   jax.ShapeDtypeStruct((B, D), e.dtype)),
        compiler_params=compiler_params,
    )(v, e, w, bias2)
    return vo, eo


def reference(v, e, weights, biases):
    """Pure-JAX transcription of the PyTorch forward (precision-unambiguous)."""
    B, D = v.shape
    c = jnp.einsum("bi,bj->bij", v, e)               # (B, D, D) outer products
    ct = jnp.swapaxes(c, 1, 2)
    c2 = c.reshape(-1, D)
    ct2 = ct.reshape(-1, D)

    def lin(x, w_row, b0):                            # Linear(dim, 1) as an explicit sum
        return jnp.sum(x * w_row[None, :], axis=-1) + b0

    v_int = lin(c2, weights[0], biases[0]) + lin(ct2, weights[1], biases[1])
    e_int = lin(c2, weights[2], biases[2]) + lin(ct2, weights[3], biases[3])
    return v_int.reshape(B, D), e_int.reshape(B, D)


if __name__ == "__main__":
    key = jax.random.PRNGKey(0)
    kv, ke, kw, kb = jax.random.split(key, 4)

    # Case 1: typical MKR dim (D < 128) -> lane-packed kernel path, grid=(2,).
    B, D = 64, 32
    v = jax.random.normal(kv, (B, D), dtype=jnp.float32)
    e = jax.random.normal(ke, (B, D), dtype=jnp.float32)
    weights = jax.random.normal(kw, (4, D), dtype=jnp.float32) * 0.1
    biases = jax.random.normal(kb, (4,), dtype=jnp.float32) * 0.1

    v_out, e_out = cross_compress_unit(v, e, weights, biases)
    jax.block_until_ready((v_out, e_out))
    v_ref, e_ref = reference(v, e, weights, biases)
    assert jnp.allclose(v_out, v_ref, atol=1e-4, rtol=1e-3)
    assert jnp.allclose(e_out, e_ref, atol=1e-4, rtol=1e-3)

    # Case 2: lane-dense dim (D % 128 == 0) -> structured VPU/XLU kernel path, grid=(2,).
    B2, D2 = 32, 128
    v2 = jax.random.normal(kv, (B2, D2), dtype=jnp.float32)
    e2 = jax.random.normal(ke, (B2, D2), dtype=jnp.float32)
    w2 = jax.random.normal(kw, (4, D2), dtype=jnp.float32) * 0.1
    b2 = jax.random.normal(kb, (4,), dtype=jnp.float32) * 0.1

    v_out2, e_out2 = cross_compress_unit(v2, e2, w2, b2)
    jax.block_until_ready((v_out2, e_out2))
    v_ref2, e_ref2 = reference(v2, e2, w2, b2)
    assert jnp.allclose(v_out2, v_ref2, atol=1e-4, rtol=1e-3)
    assert jnp.allclose(e_out2, e_ref2, atol=1e-4, rtol=1e-3)

    print("KERNEL_OK")
</pallas_src>

<mosaic_0001>
module attributes {stable_mosaic.version = 11 : i64} {
  func.func @_flat_kernel(%arg0: i32, %arg1: memref<8x128xf32, #tpu.memory_space<vmem>>, %arg2: memref<8x128xf32, #tpu.memory_space<vmem>>, %arg3: memref<128x256xf32, #tpu.memory_space<vmem>>, %arg4: memref<128x256xf32, #tpu.memory_space<vmem>>, %arg5: memref<2xf32, #tpu.memory_space<smem>>, %arg6: memref<8x128xf32, #tpu.memory_space<vmem>>, %arg7: memref<8x128xf32, #tpu.memory_space<vmem>>) attributes {dimension_semantics = [#tpu.dimension_semantics<parallel>], iteration_bounds = array<i64: 2>, scalar_prefetch = 0 : i64, scratch_operands = 0 : i64, tpu.core_type = #tpu.core_type<tc>, window_params = [{transform_indices = @transform_0, window_bounds = array<i64: 8, 128>}, {transform_indices = @transform_1, window_bounds = array<i64: 8, 128>}, {pipeline_mode = #tpu.pipeline_mode<synchronous>, transform_indices = @transform_2, window_bounds = array<i64: 128, 256>}, {pipeline_mode = #tpu.pipeline_mode<synchronous>, transform_indices = @transform_3, window_bounds = array<i64: 128, 256>}, {transform_indices = @transform_4, window_bounds = array<i64: 2>}, {transform_indices = @transform_5, window_bounds = array<i64: 8, 128>}, {transform_indices = @transform_6, window_bounds = array<i64: 8, 128>}]} {
    %c0 = arith.constant 0 : index
    %c0_0 = arith.constant 0 : index
    %0 = vector.load %arg1[%c0, %c0_0] : memref<8x128xf32, #tpu.memory_space<vmem>>, vector<8x128xf32>
    %c0_1 = arith.constant 0 : index
    %c0_2 = arith.constant 0 : index
    %1 = vector.load %arg2[%c0_1, %c0_2] : memref<8x128xf32, #tpu.memory_space<vmem>>, vector<8x128xf32>
    %c0_3 = arith.constant 0 : index
    %c0_4 = arith.constant 0 : index
    %2 = vector.load %arg3[%c0_3, %c0_4] : memref<128x256xf32, #tpu.memory_space<vmem>>, vector<128x256xf32>
    %cst = arith.constant dense<0.000000e+00> : vector<8x256xf32>
    %3 = tpu.matmul %0, %2, %cst {dimension_numbers = #tpu.dot_dimension_numbers<[1], [0], [0], [1], [0, 0, 1, 1], [], []>} : vector<8x128xf32>, vector<128x256xf32>, vector<8x256xf32> -> vector<8x256xf32>
    %c0_5 = arith.constant 0 : index
    %c0_6 = arith.constant 0 : index
    %4 = vector.load %arg4[%c0_5, %c0_6] : memref<128x256xf32, #tpu.memory_space<vmem>>, vector<128x256xf32>
    %cst_7 = arith.constant dense<0.000000e+00> : vector<8x256xf32>
    %5 = tpu.matmul %1, %4, %cst_7 {dimension_numbers = #tpu.dot_dimension_numbers<[1], [0], [0], [1], [0, 0, 1, 1], [], []>} : vector<8x128xf32>, vector<128x256xf32>, vector<8x256xf32> -> vector<8x256xf32>
    %c0_8 = arith.constant 0 : index
    %6 = memref.load %arg5[%c0_8] : memref<2xf32, #tpu.memory_space<smem>>
    %c1 = arith.constant 1 : index
    %7 = memref.load %arg5[%c1] : memref<2xf32, #tpu.memory_space<smem>>
    %8 = vector.extract_strided_slice %5 {offsets = [0, 0], sizes = [8, 128], strides = [1, 1]} : vector<8x256xf32> to vector<8x128xf32>
    %9 = arith.mulf %0, %8 : vector<8x128xf32>
    %10 = vector.extract_strided_slice %3 {offsets = [0, 0], sizes = [8, 128], strides = [1, 1]} : vector<8x256xf32> to vector<8x128xf32>
    %11 = arith.mulf %1, %10 : vector<8x128xf32>
    %12 = arith.addf %9, %11 : vector<8x128xf32>
    %13 = vector.broadcast %6 : f32 to vector<8x128xf32>
    %14 = arith.addf %12, %13 : vector<8x128xf32>
    %c0_9 = arith.constant 0 : index
    %c0_10 = arith.constant 0 : index
    %15 = vector.load %arg6[%c0_9, %c0_10] : memref<8x128xf32, #tpu.memory_space<vmem>>, vector<8x128xf32>
    tpu.vector_store %arg6[%c0_9, %c0_10], %14 {strides = array<i32>} : memref<8x128xf32, #tpu.memory_space<vmem>>, vector<8x128xf32>,
    %16 = vector.extract_strided_slice %5 {offsets = [0, 128], sizes = [8, 128], strides = [1, 1]} : vector<8x256xf32> to vector<8x128xf32>
    %17 = arith.mulf %0, %16 : vector<8x128xf32>
    %18 = vector.extract_strided_slice %3 {offsets = [0, 128], sizes = [8, 128], strides = [1, 1]} : vector<8x256xf32> to vector<8x128xf32>
    %19 = arith.mulf %1, %18 : vector<8x128xf32>
    %20 = arith.addf %17, %19 : vector<8x128xf32>
    %21 = vector.broadcast %7 : f32 to vector<8x128xf32>
    %22 = arith.addf %20, %21 : vector<8x128xf32>
    %c0_11 = arith.constant 0 : index
    %c0_12 = arith.constant 0 : index
    %23 = vector.load %arg7[%c0_11, %c0_12] : memref<8x128xf32, #tpu.memory_space<vmem>>, vector<8x128xf32>
    tpu.vector_store %arg7[%c0_11, %c0_12], %22 {strides = array<i32>} : memref<8x128xf32, #tpu.memory_space<vmem>>, vector<8x128xf32>,
    return
  }
  func.func @transform_0(%arg0: i32) -> (i32, i32) {
    %c0_i32 = arith.constant 0 : i32
    %c0_i32_0 = arith.constant 0 : i32
    return %arg0, %c0_i32 : i32, i32
  }
  func.func @transform_1(%arg0: i32) -> (i32, i32) {
    %c0_i32 = arith.constant 0 : i32
    %c0_i32_0 = arith.constant 0 : i32
    return %arg0, %c0_i32 : i32, i32
  }
  func.func @transform_2(%arg0: i32) -> (i32, i32) {
    %c0_i32 = arith.constant 0 : i32
    %c0_i32_0 = arith.constant 0 : i32
    %c0_i32_1 = arith.constant 0 : i32
    return %c0_i32, %c0_i32_0 : i32, i32
  }
  func.func @transform_3(%arg0: i32) -> (i32, i32) {
    %c0_i32 = arith.constant 0 : i32
    %c0_i32_0 = arith.constant 0 : i32
    %c0_i32_1 = arith.constant 0 : i32
    return %c0_i32, %c0_i32_0 : i32, i32
  }
  func.func @transform_4(%arg0: i32) -> i32 {
    %c0_i32 = arith.constant 0 : i32
    %c0_i32_0 = arith.constant 0 : i32
    return %c0_i32 : i32
  }
  func.func @transform_5(%arg0: i32) -> (i32, i32) {
    %c0_i32 = arith.constant 0 : i32
    %c0_i32_0 = arith.constant 0 : i32
    return %arg0, %c0_i32 : i32, i32
  }
  func.func @transform_6(%arg0: i32) -> (i32, i32) {
    %c0_i32 = arith.constant 0 : i32
    %c0_i32_0 = arith.constant 0 : i32
    return %arg0, %c0_i32 : i32, i32
  }
}

</mosaic_0001>

<bundles_post_ra>
// kernel: tpu_custom_call.1
= control target key start
LH: loop header
LB: loop body
LE: loop exit
PB: predicated region body
PF: predicated region fallthrough
CT: control target
= control target key end

     0   :  { %s1338_s0 = inlined_call_operand.hbm [shape: f32[16,128], index: 0, kind: input, shape index: {}]   ;;  %s1339_s1 = inlined_call_operand.hbm [shape: f32[16,128], index: 1, kind: input, shape index: {}]   ;;  %s1340_s2 = inlined_call_operand.hbm [shape: f32[128,256], index: 2, kind: input, shape index: {}]   ;;  %s1341_s3 = inlined_call_operand.hbm [shape: f32[128,256], index: 3, kind: input, shape index: {}]   ;;  %s1342_s4 = inlined_call_operand.vmem [shape: f32[2], index: 4, kind: input, shape index: {}]   ;;  %s1343_s5 = inlined_call_operand.hbm [shape: f32[16,128], index: 5, kind: output, shape index: {0}]   ;;  %s1344_s6 = inlined_call_operand.hbm [shape: f32[16,128], index: 6, kind: output, shape index: {1}]  }
   0x1   :  { %1346 = sst [smem:[#allocation24_spill]] %s1340_s2 }
   0x2   :  { %1347 = sst [smem:[#allocation25_spill]] %s1341_s3 }
   0x3   :  { %1348 = sst [smem:[#allocation26_spill]] %s1342_s4 }
   0x4   :  { %12 = vsyncpa [#allocation3], 0 }
   0x5   :  { %14 = vsyncpa [#allocation3 + $0x1], 0 }
   0x6   :  { %15 = vsyncpa [#allocation7], 0 }
   0x7   :  { %17 = vsyncpa [#allocation7 + $0x1], 0 }
   0x8   :  { %18 = vsyncpa [#allocation10], 0 }
   0x9   :  { %19 = vsyncpa [#allocation5], 0 }
   0xa   :  { %20 = vsyncpa [#allocation4], 0 }
   0xb   :  { %22 = vsyncpa [#allocation4 + $0x1], 0 }
   0xc   :  { %23 = vsyncpa [#allocation14], 0 }
   0xd   :  { %25 = vsyncpa [#allocation14 + $0x1], 0  ;;  %s1123_s21 = smov 0   ;;  %s1125_s22 = smov 0  }
   0xe   :  { %s1127_s23 = smov 0   ;;  %s1129_s24 = smov 0  }
   0xf LB: > { %1349 = sst [smem:[#allocation22_spill]] %s1077_s23  ;;  %s1147_s28 = sadd.s32 4294967295, %s1081_s24   ;;  %s1081_s24 = sphi %s1129_s24, %s1365_s24   ;;  %s1077_s23 = sphi %s1127_s23, %s1362_s23   ;;  %s1073_s22 = sphi %s1125_s22, %s1364_s22   ;;  %s1069_s21 = sphi %s1123_s21, %s1363_s21  }
  0x10   : > { %s1350_s2 = sld [smem:[#allocation24_spill]]  ;;  %p719_p0 = scmp.ge.s32.totalorder %s1081_s24, 1 }
  0x11   : > { %p52_p1 = scmp.eq.s32.totalorder %s1147_s28, 0  ;;  %p203_p2 = scmp.lt.s32.totalorder %s1081_s24, 3 }
  0x12   : > { %s1083_s30 = smov [#allocation8]   ;;  %s1352_s3 = sld [smem:[#allocation25_spill]] }
  0x13   : > { %p1152_p3 = pnand %p719_p0, %p203_p2  ;;  %s216_s7 = sshll.u32 %s1083_s30, 4  ;;  %s217_s7 = int_to_ptr.vmem [resolvable:$true] %s216_s7 }
  0x14   : > { %s1353_s4 = sld [smem:[#allocation26_spill]]  ;;  %s1084_s14 = smov [#allocation9]  }
  0x15   : > { %p763_p4 = pneg %p1152_p3  ;;  %s230_s15 = sshll.u32 %s1084_s14, 4  ;;  %s231_s15 = int_to_ptr.vmem [resolvable:$true] %s230_s15 }
  0x16   : > { %s214_s27 = sshll.u32 %s1350_s2, 4  ;;  %s1085_s16 = smov 256   ;;  %s215_s27 = int_to_ptr.hbm [resolvable:$true] %s214_s27 }
  0x17   : > { %p764_p6 = pnand %p763_p4, %p52_p1  ;;  %s1086_s17 = smov 16  }
  0x18   : > { %s228_s10 = sshll.u32 %s1352_s3, 4  ;;  %s1087_s18 = smov [#allocation11]   ;;  %s229_s10 = int_to_ptr.hbm [resolvable:$true] %s228_s10 }
  0x19   : > { %766 = dma.hbm_to_vmem [thread:$0]  (!%p764_p6), %s215_s27, 4096, %s217_s7, [#allocation7], %s1085_s16, %s1085_s16, %s1086_s17  }
  0x1a   : > { %s243_s13 = sshll.u32 %s1353_s4, 4  ;;  %s718_s19 = sadd.s32 4294967294, %s1081_s24   ;;  %s244_s13 = int_to_ptr.vmem [resolvable:$true] %s243_s13 }
  0x1b   : > { %769 = dma.hbm_to_vmem [thread:$0]  (!%p764_p6), %s229_s10, 4096, %s231_s15, [#allocation10], %s1085_s16, %s1085_s16, %s1086_s17  }
  0x1c   : > { %772 = dma.vmem_to_smem (!%p764_p6), %s244_s13, 16, %s1087_s18, [#allocation5]  }
  0x1d   : > { %s1169_s20 = sadd.s32 1, %s1081_s24   ;;  %s38_s25 = sadd.s32 1, %s1077_s23 }
  0x1e   : > { %s35_s26 = ssub.s32 %s1081_s24, %s1169_s20  ;;  %p45_p7 = scmp.ne.s32.totalorder %s1077_s23, %s1073_s22 }
  0x1f   : > { %p36_p8 = scmp.eq.s32.totalorder %s35_s26, 0  ;;  %p46_p9 = scmp.eq.s32.totalorder %s1081_s24, 0 }
  0x20   : > { %p51_p10 = scmp.ne.s32.totalorder %s1073_s22, %s1069_s21  ;;  %p164_p11 = scmp.eq.s32.totalorder %s1147_s28, 1 }
  0x21   : > { %s1181_s27 = scalar_select %p36_p8, %s1077_s23, %s38_s25  }
  0x22   : > { %p1183_p12 = por %p46_p9, %p45_p7  ;;  %p1189_p13 = por %p52_p1, %p51_p10 }
  0x23   : > { %1354 = sst [smem:[#allocation23_spill]] %s1181_s27  ;;  %p1193_p0 = por %p164_p11, %p45_p7 }
  0x24   : > { %p170_p2 = scmp.eq.s32.totalorder %s718_s19, 1  ;;  %p790_p4 = scmp.lt.s32.totalorder %s1081_s24, 2 }
  0x25   : > { %s254_s9 = sand.u32 1, %s1077_s23   ;;  %s725_s12 = sshll.u32 %s1081_s24, 3 }
  0x26   : > { %p1199_p6 = por %p170_p2, %p51_p10  ;;  %s724_s11 = sshll.u32 %s254_s9, 3 }
  0x27   : > { %s262_s15 = scalar_lea.hbm %s1338_s0, %s725_s12  ;;  %s258_s17 = scalar_lea.vmem [#allocation2], %s724_s11 }
  0x28   : > { %s264_s16 = sshll.u32 %s262_s15, 4  ;;  %s266_s18 = sshll.u32 %s258_s17, 4  ;;  %s265_s16 = int_to_ptr.hbm [resolvable:$true] %s264_s16  ;;  %s267_s18 = int_to_ptr.vmem [resolvable:$true] %s266_s18 }
  0x29   : > { %p1209_p7 = pnand %p790_p4, %p1183_p12  ;;  %s281_s2 = scalar_lea.hbm %s1339_s1, %s725_s12 }
  0x2a   : > { %s273_s3 = sand.u32 1, %s1081_s24   ;;  %s255_s4 = scalar_lea.sflag [#allocation3], %s254_s9 }
  0x2b   : > { %s907_s13 = sshra.s32 %s265_s16, 4  ;;  %p911_p9 = pneg %p1209_p7  ;;  %s908_s13 = int_to_ptr.hbm [resolvable:$true] %s907_s13 }
  0x2c   : > { %s909_s14 = scalar_lea.hbm %s908_s13, 8  ;;  %s914_s17 = scalar_lea.hbm %s1338_s0, 16 }
  0x2d   : > { %p910_p8 = scmp.ne.s32.totalorder %s908_s13, %s909_s14  ;;  %p915_p12 = scmp.lt.s32.totalorder %s908_s13, %s1338_s0 }
  0x2e   : > { %p916_p2 = scmp.lt.s32.totalorder %s914_s17, %s909_s14 }
  0x2f   : > { %p912_p10 = pnand %p911_p9, %p910_p8 }
  0x30   : > { %p917_p4 = por %p916_p2, %p915_p12 }
  0x31   : > { %p913_p11 = pneg %p912_p10 }
  0x33   : > { %p918_p5 = pnand %p917_p4, %p913_p11 }
  0x35   : > { %921 = shalt.err (!%p918_p5)
}
  0x36   : > { %776 = dma.hbm_to_vmem [thread:$0]  (!%p1209_p7), %s265_s16, 128, %s267_s18, %s255_s4  }
  0x37   : > { %s283_s9 = sshll.u32 %s281_s2, 4  ;;  %s277_s12 = scalar_lea.vmem [#allocation6], %s724_s11  ;;  %s284_s9 = int_to_ptr.hbm [resolvable:$true] %s283_s9 }
  0x38   : > { %s285_s27 = sshll.u32 %s277_s12, 4  ;;  %s274_s23 = scalar_lea.sflag [#allocation7], %s273_s3  ;;  %s286_s27 = int_to_ptr.vmem [resolvable:$true] %s285_s27 }
  0x39   : > { %s937_s30 = sshra.s32 %s284_s9, 4  ;;  %s944_s17 = scalar_lea.hbm %s1339_s1, 16  ;;  %s938_s30 = int_to_ptr.hbm [resolvable:$true] %s937_s30 }
  0x3a   : > { %s939_s15 = scalar_lea.hbm %s938_s30, 8  ;;  %p945_p5 = scmp.lt.s32.totalorder %s938_s30, %s1339_s1 }
  0x3b   : > { %p940_p8 = scmp.ne.s32.totalorder %s938_s30, %s939_s15  ;;  %p946_p11 = scmp.lt.s32.totalorder %s944_s17, %s939_s15 }
  0x3d   : > { %p942_p10 = pnand %p940_p8, %p911_p9  ;;  %p947_p2 = por %p946_p11, %p945_p5 }
  0x3f   : > { %p943_p12 = pneg %p942_p10 }
  0x41   : > { %p948_p4 = pnand %p947_p2, %p943_p12 }
  0x43   : > { %951 = shalt.err (!%p948_p4)
}
  0x44   : > { %779 = dma.hbm_to_vmem [thread:$0]  (!%p1209_p7), %s284_s9, 128, %s286_s27, %s274_s23  }
  0x45   : > { %294 = sbr.rel (%p1152_p3) target bundleno = 271 (0x10f), region = 40  ;;  %s1244_s2 = sand.u32 (!%p1152_p3), 1, %s1073_s22  }
  0x46   : > { %s1247_s3 = sshll.u32 (!%p1152_p3), %s1244_s2, 3  ;;  %s297_s11 = scalar_lea.sflag (!%p1152_p3), [#allocation3], %s1244_s2 }
  0x47   : > { %s300_s16 = scalar_lea.vmem (!%p1152_p3), [#allocation2], %s1247_s3 }
  0x4a   : > { %1040 = dma.done.wait (%p1189_p13), %s297_s11, 128  }
  0x4b   : > { %1042 = vsyncadd (%p1189_p13), %s297_s11, 4294967168  ;;  %s306_s23 = sand.u32 1, %s1147_s28   ;;  %s310_s27 = scalar_lea.vmem [#allocation6], %s1247_s3 }
  0x4c   : > { %s307_s29 = scalar_lea.sflag [#allocation7], %s306_s23 }
  0x4d   : > { %1044 = dma.done.wait (%p1189_p13), %s307_s29, 128  }
  0x4e   : > { %1046 = vsyncadd (%p1189_p13), %s307_s29, 4294967168 }
  0x4f   : > { %1048 = dma.done.wait (%p52_p1), [#allocation7], 4096  }
  0x50   : > { %1050 = vsyncadd (%p52_p1), [#allocation7], 4294963200 }
  0x51   : > { %1052 = dma.done.wait (%p52_p1), [#allocation10], 4096  }
  0x52   : > { %1054 = vsyncadd (%p52_p1), [#allocation10], 4294963200 }
  0x53   : > { %1056 = dma.done.wait (%p52_p1), [#allocation5], 16  }
  0x54   : > { %1058 = vsyncadd (%p52_p1), [#allocation5], 4294967280 }
  0x55   : > { %331 = sfence }
  0x56   : > { %v470_v0 = vld [vmem:[#allocation9 + $0xf0] sm:$0xff]  ;;  %v471_v1 = vld [vmem:[#allocation9 + $0xf8] sm:$0xff]  ;;  %v468_v2 = vld [vmem:[#allocation9 + $0xe0] sm:$0xff]  ;;  %s512_s7 = sld [smem:[#allocation11]]  ;;  %s739_s19 = sshll.u32 %s1147_s28, 3 }
  0x57   : > { %472 = vmatpush.msra.mxu2 %v470_v0  ;;  %492 = vmatpush.msra.mxu3 %v471_v1  ;;  %v469_v3 = vld [vmem:[#allocation9 + $0xe8] sm:$0xff]  ;;  %v466_v4 = vld [vmem:[#allocation9 + $0xd0] sm:$0xff]  ;;  %v467_v5 = vld [vmem:[#allocation9 + $0xd8] sm:$0xff]  ;;  %s736_s18 = sld [smem:[#allocation11 + $0x1]]  ;;  %s542_s12 = scalar_lea.hbm %s1343_s5, %s739_s19 }
  0x58   : > { %v398_v6 = vld [vmem:[#allocation8 + $0xf0] sm:$0xff]  ;;  %v399_v7 = vld [vmem:[#allocation8 + $0xf8] sm:$0xff]  ;;  %v396_v8 = vld [vmem:[#allocation8 + $0xe0] sm:$0xff]  ;;  %s556_s13 = scalar_lea.hbm %s1344_s6, %s739_s19  ;;  %s358_s14 = scalar_lea.vmem [#allocation12], %s1247_s3 }
  0x59   : > { %473 = vmatpush.msra.mxu2 %v468_v2  ;;  %493 = vmatpush.msra.mxu3 %v469_v3  ;;  %v397_v9 = vld [vmem:[#allocation8 + $0xe8] sm:$0xff]  ;;  %v464_v10 = vld [vmem:[#allocation9 + $0xc0] sm:$0xff]  ;;  %v394_v12 = vld [vmem:[#allocation8 + $0xd0] sm:$0xff]  ;;  %s1285_s17 = sshll.u32 %s358_s14, 4  ;;  %s546_s28 = sshll.u32 %s542_s12, 4  ;;  %s545_s17 = int_to_ptr.vmem [resolvable:$true] %s1285_s17  ;;  %s547_s28 = int_to_ptr.hbm [resolvable:$true] %s546_s28 }
  0x5a   : > { %400 = vmatpush.msra.mxu0 %v398_v6  ;;  %420 = vmatpush.msra.mxu1 %v399_v7  ;;  %v465_v11 = vld [vmem:[#allocation9 + $0xc8] sm:$0xff]  ;;  %v395_v13 = vld [vmem:[#allocation8 + $0xd8] sm:$0xff]  ;;  %v462_v14 = vld [vmem:[#allocation9 + $0xb0] sm:$0xff]  ;;  %s365_s25 = scalar_lea.vmem [#allocation13], %s1247_s3  ;;  %s560_s11 = sshll.u32 %s556_s13, 4  ;;  %s1292_s11 = int_to_ptr.hbm [resolvable:$true] %s560_s11 }
  0x5b   : > { %474 = vmatpush.msra.mxu2 %v466_v4  ;;  %494 = vmatpush.msra.mxu3 %v467_v5  ;;  %v463_v15 = vld [vmem:[#allocation9 + $0xb8] sm:$0xff]  ;;  %v392_v16 = vld [vmem:[#allocation8 + $0xc0] sm:$0xff]  ;;  %v393_v17 = vld [vmem:[#allocation8 + $0xc8] sm:$0xff]  ;;  %s1288_s4 = sshll.u32 %s365_s25, 4  ;;  %s981_s23 = sshra.s32 %s547_s28, 4  ;;  %s559_s4 = int_to_ptr.vmem [resolvable:$true] %s1288_s4  ;;  %s982_s23 = int_to_ptr.hbm [resolvable:$true] %s981_s23 }
  0x5c   : > { %401 = vmatpush.msra.mxu0 %v396_v8  ;;  %421 = vmatpush.msra.mxu1 %v397_v9  ;;  %v460_v18 = vld [vmem:[#allocation9 + $0xa0] sm:$0xff]  ;;  %v461_v19 = vld [vmem:[#allocation9 + $0xa8] sm:$0xff]  ;;  %v390_v20 = vld [vmem:[#allocation8 + $0xb0] sm:$0xff]  ;;  %s983_s29 = scalar_lea.hbm %s982_s23, 8  ;;  %p988_p7 = scmp.lt.s32.totalorder %s982_s23, %s1343_s5 }
  0x5d   : > { %475 = vmatpush.msra.mxu2 %v464_v10  ;;  %495 = vmatpush.msra.mxu3 %v465_v11  ;;  %v391_v21 = vld [vmem:[#allocation8 + $0xb8] sm:$0xff]  ;;  %v458_v22 = vld [vmem:[#allocation9 + $0x90] sm:$0xff]  ;;  %v388_v24 = vld [vmem:[#allocation8 + $0xa0] sm:$0xff]  ;;  %v517_v10 = vstv %s512_s7  ;;  %v523_v11 = vstv %s736_s18  ;;  %p984_p1 = scmp.ne.s32.totalorder %s982_s23, %s983_s29  ;;  %s987_s7 = scalar_lea.hbm %s1343_s5, 16 }
  0x5e   : > { %402 = vmatpush.msra.mxu0 %v394_v12  ;;  %422 = vmatpush.msra.mxu1 %v395_v13  ;;  %v459_v23 = vld [vmem:[#allocation9 + $0x98] sm:$0xff]  ;;  %v389_v25 = vld [vmem:[#allocation8 + $0xa8] sm:$0xff]  ;;  %v456_v26 = vld [vmem:[#allocation9 + $0x80] sm:$0xff]  ;;  %p989_p9 = scmp.lt.s32.totalorder %s987_s7, %s983_s29 }
  0x5f   : > { %476 = vmatpush.msra.mxu2 %v462_v14  ;;  %496 = vmatpush.msra.mxu3 %v463_v15  ;;  %v457_v27 = vld [vmem:[#allocation9 + $0x88] sm:$0xff]  ;;  %v386_v28 = vld [vmem:[#allocation8 + $0x90] sm:$0xff]  ;;  %v387_v29 = vld [vmem:[#allocation8 + $0x98] sm:$0xff]  ;;  %p985_p3 = pnand %p984_p1, %p1193_p0 }
  0x60   : > { %403 = vmatpush.msra.mxu0 %v392_v16  ;;  %423 = vmatpush.msra.mxu1 %v393_v17  ;;  %v454_v30 = vld [vmem:[#allocation9 + $0x70] sm:$0xff]  ;;  %v455_v31 = vld [vmem:[#allocation9 + $0x78] sm:$0xff]  ;;  %v384_v32 = vld [vmem:[#allocation8 + $0x80] sm:$0xff]  ;;  %p990_p8 = por %p989_p9, %p988_p7 }
  0x61   : > { %477 = vmatpush.msra.mxu2 %v460_v18  ;;  %497 = vmatpush.msra.mxu3 %v461_v19  ;;  %v385_v33 = vld [vmem:[#allocation8 + $0x88] sm:$0xff]  ;;  %v452_v34 = vld [vmem:[#allocation9 + $0x60] sm:$0xff]  ;;  %v382_v36 = vld [vmem:[#allocation8 + $0x70] sm:$0xff]  ;;  %p986_p13 = pneg %p985_p3 }
  0x62   : > { %404 = vmatpush.msra.mxu0 %v390_v20  ;;  %424 = vmatpush.msra.mxu1 %v391_v21  ;;  %v453_v35 = vld [vmem:[#allocation9 + $0x68] sm:$0xff]  ;;  %v383_v37 = vld [vmem:[#allocation8 + $0x78] sm:$0xff]  ;;  %v450_v38 = vld [vmem:[#allocation9 + $0x50] sm:$0xff] }
  0x63   : > { %478 = vmatpush.msra.mxu2 %v458_v22  ;;  %498 = vmatpush.msra.mxu3 %v459_v23  ;;  %v451_v39 = vld [vmem:[#allocation9 + $0x58] sm:$0xff]  ;;  %v380_v40 = vld [vmem:[#allocation8 + $0x60] sm:$0xff]  ;;  %v381_v41 = vld [vmem:[#allocation8 + $0x68] sm:$0xff]  ;;  %p991_p10 = pnand %p990_p8, %p986_p13 }
  0x64   : > { %405 = vmatpush.msra.mxu0 %v388_v24  ;;  %425 = vmatpush.msra.mxu1 %v389_v25  ;;  %v448_v42 = vld [vmem:[#allocation9 + $0x40] sm:$0xff]  ;;  %v449_v43 = vld [vmem:[#allocation9 + $0x48] sm:$0xff]  ;;  %v378_v44 = vld [vmem:[#allocation8 + $0x50] sm:$0xff] }
  0x65   : > { %479 = vmatpush.msra.mxu2 %v456_v26  ;;  %499 = vmatpush.msra.mxu3 %v457_v27  ;;  %v379_v45 = vld [vmem:[#allocation8 + $0x58] sm:$0xff]  ;;  %v446_v46 = vld [vmem:[#allocation9 + $0x30] sm:$0xff]  ;;  %v376_v48 = vld [vmem:[#allocation8 + $0x40] sm:$0xff] }
  0x66   : > { %406 = vmatpush.msra.mxu0 %v386_v28  ;;  %426 = vmatpush.msra.mxu1 %v387_v29  ;;  %v447_v47 = vld [vmem:[#allocation9 + $0x38] sm:$0xff]  ;;  %v377_v49 = vld [vmem:[#allocation8 + $0x48] sm:$0xff]  ;;  %v444_v50 = vld [vmem:[#allocation9 + $0x20] sm:$0xff] }
  0x67   : > { %480 = vmatpush.msra.mxu2 %v454_v30  ;;  %500 = vmatpush.msra.mxu3 %v455_v31  ;;  %v445_v51 = vld [vmem:[#allocation9 + $0x28] sm:$0xff]  ;;  %v374_v52 = vld [vmem:[#allocation8 + $0x30] sm:$0xff]  ;;  %v375_v53 = vld [vmem:[#allocation8 + $0x38] sm:$0xff] }
  0x68   : > { %407 = vmatpush.msra.mxu0 %v384_v32  ;;  %427 = vmatpush.msra.mxu1 %v385_v33  ;;  %v442_v54 = vld [vmem:[#allocation9 + $0x10] sm:$0xff]  ;;  %v443_v55 = vld [vmem:[#allocation9 + $0x18] sm:$0xff]  ;;  %v372_v56 = vld [vmem:[#allocation8 + $0x20] sm:$0xff] }
  0x69   : > { %481 = vmatpush.msra.mxu2 %v452_v34  ;;  %501 = vmatpush.msra.mxu3 %v453_v35  ;;  %v373_v57 = vld [vmem:[#allocation8 + $0x28] sm:$0xff]  ;;  %v440_v58 = vld [vmem:[#allocation9] sm:$0xff]  ;;  %v367_v60 = vld [vmem:[%s310_s27] sm:$0xff] }
  0x6a   : > { %408 = vmatpush.msra.mxu0 %v382_v36  ;;  %428 = vmatpush.msra.mxu1 %v383_v37  ;;  %v441_v59 = vld [vmem:[#allocation9 + $0x8] sm:$0xff]  ;;  %v370_v61 = vld [vmem:[#allocation8 + $0x10] sm:$0xff]  ;;  %v371_v62 = vld [vmem:[#allocation8 + $0x18] sm:$0xff] }
  0x6b   : > { %482 = vmatpush.msra.mxu2 %v450_v38  ;;  %502 = vmatpush.msra.mxu3 %v451_v39  ;;  %v368_v63 = vld [vmem:[#allocation8] sm:$0xff]  ;;  %v369_v0 = vld [vmem:[#allocation8 + $0x8] sm:$0xff] }
  0x6c   : > { %409 = vmatpush.msra.mxu0 %v380_v40  ;;  %429 = vmatpush.msra.mxu1 %v381_v41  ;;  %v366_v1 = vld [vmem:[%s300_s16] sm:$0xff]  ;;  %s527_s16 = scalar_lea.sflag [#allocation4], %s1244_s2 }
  0x6d   : > { %483 = vmatpush.msra.mxu2 %v448_v42  ;;  %503 = vmatpush.msra.mxu3 %v449_v43 }
  0x6e   : > { %410 = vmatpush.msra.mxu0 %v378_v44  ;;  %430 = vmatpush.msra.mxu1 %v379_v45 }
  0x6f   : > { %484 = vmatpush.msra.mxu2 %v446_v46  ;;  %504 = vmatpush.msra.mxu3 %v447_v47 }
  0x70   : > { %411 = vmatpush.msra.mxu0 %v376_v48  ;;  %431 = vmatpush.msra.mxu1 %v377_v49 }
  0x71   : > { %485 = vmatpush.msra.mxu2 %v444_v50  ;;  %505 = vmatpush.msra.mxu3 %v445_v51 }
  0x72   : > { %412 = vmatpush.msra.mxu0 %v374_v52  ;;  %432 = vmatpush.msra.mxu1 %v375_v53 }
  0x73   : > { %486 = vmatpush.msra.mxu2 %v442_v54  ;;  %506 = vmatpush.msra.mxu3 %v443_v55 }
  0x74   : > { %413 = vmatpush.msra.mxu0 %v372_v56  ;;  %433 = vmatpush.msra.mxu1 %v373_v57 }
  0x75   : > { %487 = vmatpush.msra.mxu2 %v440_v58  ;;  %507 = vmatpush.msra.mxu3 %v441_v59 }
  0x76   : > { %488 = vmatmul.f32.vlgmr.msra.gmra.mxu2 %v367_v60  ;;  %508 = vmatmul.f32.vlgmr.msra.gmra.mxu3 %v367_v60 }
  0x77   : > { %414 = vmatpush.msra.mxu0 %v370_v61  ;;  %434 = vmatpush.msra.mxu1 %v371_v62 }
  0x79   : > { %415 = vmatpush.msra.mxu0 %v368_v63  ;;  %435 = vmatpush.msra.mxu1 %v369_v0 }
  0x7a   : > { %416 = vmatmul.f32.vlgmr.msra.gmra.mxu0 %v366_v1  ;;  %436 = vmatmul.f32.vlgmr.msra.gmra.mxu1 %v366_v1 }
  0xf7   : > { %v417_v2 = vpop.f32.mrf.mxu0  ;;  %v437_v3 = vpop.f32.mrf.mxu1 }
  0xf8   : > { %v515_v4 = vmul.f32 %v417_v2, %v367_v60  ;;  %v521_v5 = vmul.f32 %v437_v3, %v367_v60 }
  0xf9   : > { %v489_v6 = vpop.f32.mrf.mxu2  ;;  %v509_v7 = vpop.f32.mrf.mxu3 }
  0xfa   : > { %v514_v8 = vmul.f32 %v489_v6, %v366_v1  ;;  %v520_v9 = vmul.f32 %v509_v7, %v366_v1 }
  0xfc   : > { %v516_v12 = vadd.f32 %v515_v4, %v514_v8  ;;  %v522_v13 = vadd.f32 %v521_v5, %v520_v9 }
  0xfe   : > { %v518_v14 = vadd.f32 %v517_v10, %v516_v12  ;;  %v524_v15 = vadd.f32 %v523_v11, %v522_v13 }
 0x100   : > { %519 = vst [vmem:[%s358_s14] sm:$0xff] %v518_v14 }
 0x101   : > { %994 = shalt.err (!%p991_p10)
}
 0x102   : > { %759 = dma.vmem_to_hbm [thread:$0]  (%p1193_p0), %s545_s17, 128, %s547_s28, %s527_s16   ;;  %525 = vst [vmem:[%s365_s25] sm:$0xff] %v524_v15 }
 0x103   : > { %s532_s26 = scalar_lea.sflag [#allocation14], %s1244_s2  ;;  %s1009_s9 = sshra.s32 %s1292_s11, 4  ;;  %s1010_s9 = int_to_ptr.hbm [resolvable:$true] %s1009_s9 }
 0x104   : > { %s1011_s12 = scalar_lea.hbm %s1010_s9, 8  ;;  %s1015_s13 = scalar_lea.hbm %s1344_s6, 16 }
 0x105   : > { %p1012_p12 = scmp.ne.s32.totalorder %s1010_s9, %s1011_s12  ;;  %p1016_p2 = scmp.lt.s32.totalorder %s1010_s9, %s1344_s6 }
 0x106   : > { %p1017_p4 = scmp.lt.s32.totalorder %s1015_s13, %s1011_s12 }
 0x107   : > { %p1013_p5 = pnand %p1012_p12, %p1193_p0 }
 0x108   : > { %p1018_p1 = por %p1017_p4, %p1016_p2 }
 0x109   : > { %p1014_p11 = pneg %p1013_p5 }
 0x10b   : > { %p1019_p3 = pnand %p1018_p1, %p1014_p11 }
 0x10d   : > { %1022 = shalt.err (!%p1019_p3)
}
 0x10e   : > { %760 = dma.vmem_to_hbm [thread:$0]  (%p1193_p0), %s559_s4, 128, %s1292_s11, %s532_s26  }
 0x10f PF: > { %s572_s2 = sand.u32 1, %s1069_s21   ;;  %p1360_p13 = scmp.ge.s32.totalorder %s1081_s24, 2 }
 0x110   : > { %s573_s17 = scalar_lea.sflag [#allocation4], %s572_s2 }
 0x111   : > { %p781_p7 = pnand %p1360_p13, %p1199_p6 }
 0x113   : > { %p782_p9 = pneg %p781_p7 }
 0x115   : > { %1060 = dma.done.wait (%p782_p9), %s573_s17, 128  }
 0x116   : > { %1062 = vsyncadd (%p782_p9), %s573_s17, 4294967168  ;;  %s583_s28 = scalar_lea.sflag [#allocation14], %s572_s2 }
 0x117   : > { %1064 = dma.done.wait (%p782_p9), %s583_s28, 128  }
 0x118   : > { %1066 = vsyncadd (%p782_p9), %s583_s28, 4294967168  ;;  %s1361_s8 = sld [smem:[#allocation22_spill]]  ;;  %p28_p0 = scmp.ge.s32.totalorder %s1169_s20, 4  }
 0x119   : > { %s1362_s23 = sld [smem:[#allocation23_spill]]  ;;  %s1363_s21 = smov %s1073_s22 }
 0x11a   : > { %s1365_s24 = smov %s1169_s20  ;;  %30 = sbr.rel (!%p28_p0) target bundleno = 15 (0xf), region = 128 }
 0x11e   : > { %s1364_s22 = smov %s1361_s8 }
 0x11f   :  { %589 = vsyncpa [#allocation3], 1 }
 0x120   :  { %591 = vsyncpa [#allocation3 + $0x1], 1 }
 0x121   :  { %592 = vsyncpa [#allocation7], 1 }
 0x122   :  { %594 = vsyncpa [#allocation7 + $0x1], 1 }
 0x123   :  { %595 = vsyncpa [#allocation10], 1 }
 0x124   :  { %596 = vsyncpa [#allocation4], 1 }
 0x125   :  { %598 = vsyncpa [#allocation4 + $0x1], 1 }
 0x126   :  { %599 = vsyncpa [#allocation14], 1 }
 0x127   :  { %601 = vsyncpa [#allocation14 + $0x1], 1 }
 0x128   :  { %602 = vsyncpa [#allocation5], 1 }
 0x129   :  { %604 = vsyncpa [#allocation5 + $0x1], 1 }

</bundles_post_ra>
